<compile_context>
chip_gen: v5e
topology: v5e:2x2
jax: 0.10.0
libtpu: 0.0.40
codegen_flags: <defaults>
</compile_context>

<pallas_src>
import functools

import jax
import jax.numpy as jnp
from jax.experimental import pallas as pl
from jax.experimental.pallas import tpu as pltpu


def _round_up(x, m):
    return ((x + m - 1) // m) * m


def _pick_tile_n(n, c):
    """Largest multiple-of-8 row tile whose double-buffered logits block stays
    within a conservative VMEM budget across v5e/v6e/v7x."""
    budget_bytes = 8 * 1024 * 1024            # 2 x TILE_N x C x 4B <= 8 MiB
    rows_by_vmem = max(8, (budget_bytes // (2 * 4 * c)) // 8 * 8)
    tile = min(1024, rows_by_vmem, _round_up(n, 8))
    return max(8, (tile // 8) * 8)


def _focal_loss_kernel(logits_ref, targets_ref, alpha_ref, out_ref,
                       *, gamma, size_average, n_valid, tile_n):
    step = pl.program_id(0)

    @pl.when(step == 0)
    def _init():
        out_ref[...] = jnp.zeros_like(out_ref)

    x = logits_ref[...].astype(jnp.float32)           # (TILE_N, C)
    t = targets_ref[...]                              # (TILE_N, 1) int32
    alpha_row = alpha_ref[...].astype(jnp.float32)    # (1, C)
    tn, c = x.shape

    # one-hot class mask via iota == target (scatter_ equivalent)
    col = jax.lax.broadcasted_iota(jnp.int32, (tn, c), 1)
    mask = (col == t).astype(jnp.float32)             # (TILE_N, C)

    # target log-prob via log-softmax (no full softmax divide, no log(0))
    m = jnp.max(x, axis=1, keepdims=True)             # (TILE_N, 1)
    sumexp = jnp.sum(jnp.exp(x - m), axis=1, keepdims=True)
    x_t = jnp.sum(x * mask, axis=1, keepdims=True)    # gathered logit
    log_p = (x_t - m) - jnp.log(sumexp)               # (TILE_N, 1), <= 0
    probs = jnp.exp(log_p)                            # in [0, 1]

    alpha_g = jnp.sum(mask * alpha_row, axis=1, keepdims=True)  # (TILE_N, 1)

    u = 1.0 - probs
    g = float(gamma)
    if g == int(g) and 0 <= int(g) <= 8:
        # exact integer power: plain VPU multiplies, no EUP transcendentals
        pw = jnp.ones_like(u)
        for _ in range(int(g)):
            pw = pw * u
    else:
        pw = jnp.power(jnp.maximum(u, 0.0), g)

    per_row = -alpha_g * pw * log_p                   # (TILE_N, 1)

    # mask padded rows of the final tile (N not a multiple of TILE_N)
    row = step * tile_n + jax.lax.broadcasted_iota(jnp.int32, (tn, 1), 0)
    per_row = jnp.where(row < n_valid, per_row, 0.0)

    out_ref[...] += jnp.sum(per_row).reshape(1, 1)

    @pl.when(step == pl.num_programs(0) - 1)
    def _finalize():
        if size_average:
            out_ref[...] = out_ref[...] * (1.0 / float(n_valid))


def focal_loss(logits, targets, alpha, *, gamma=2, size_average=True,
               tile_n=None):
    """logits: (N, C) float; targets: (N,) int; alpha: (C, 1) float."""
    n, c = logits.shape
    if tile_n is None:
        tile_n = _pick_tile_n(n, c)
    assert tile_n % 8 == 0 and tile_n >= 8

    num_tiles = -(-n // tile_n)
    padded_n = num_tiles * tile_n

    targets_2d = targets.reshape(n, 1).astype(jnp.int32)
    logits_f = logits
    if padded_n != n:
        logits_f = jnp.pad(logits_f, ((0, padded_n - n), (0, 0)))
        targets_2d = jnp.pad(targets_2d, ((0, padded_n - n), (0, 0)))
    alpha_row = alpha.reshape(1, c).astype(jnp.float32)

    kernel = functools.partial(
        _focal_loss_kernel, gamma=float(gamma), size_average=size_average,
        n_valid=n, tile_n=tile_n)

    out = pl.pallas_call(
        kernel,
        out_shape=jax.ShapeDtypeStruct((1, 1), jnp.float32),
        grid=(num_tiles,),
        in_specs=[
            pl.BlockSpec((tile_n, c), lambda i: (i, 0)),   # logits stream
            pl.BlockSpec((tile_n, 1), lambda i: (i, 0)),   # targets stream
            pl.BlockSpec((1, c), lambda i: (0, 0)),        # alpha row (resident)
        ],
        out_specs=pl.BlockSpec((1, 1), lambda i: (0, 0)),  # resident accumulator
        compiler_params=pltpu.CompilerParams(
            dimension_semantics=("arbitrary",),
            vmem_limit_bytes=32 * 1024 * 1024),
    )(logits_f, targets_2d, alpha_row)
    return out[0, 0]


def _focal_loss_ref(logits, targets, alpha, *, gamma=2, size_average=True):
    p = jax.nn.softmax(logits.astype(jnp.float32), axis=1)
    probs = jnp.take_along_axis(p, targets[:, None], axis=1)     # (N, 1)
    alpha_g = alpha.reshape(-1)[targets][:, None]                # (N, 1)
    batch_loss = -alpha_g * (1.0 - probs) ** gamma * jnp.log(probs)
    return jnp.mean(batch_loss) if size_average else jnp.sum(batch_loss)


if __name__ == "__main__":
    key = jax.random.PRNGKey(0)
    k1, k2, k3, k4 = jax.random.split(key, 4)

    # Case 1: small shapes consistent with (batch, class_num) logits.
    N1, C1 = 8, 16
    logits1 = jax.random.normal(k1, (N1, C1), dtype=jnp.float32)
    targets1 = jax.random.randint(k2, (N1,), 0, C1, dtype=jnp.int32)
    alpha1 = jnp.ones((C1, 1), dtype=jnp.float32)   # default init (ones)

    loss1 = focal_loss(logits1, targets1, alpha1, gamma=2, size_average=True)
    jax.block_until_ready(loss1)
    ref1 = _focal_loss_ref(logits1, targets1, alpha1, gamma=2, size_average=True)
    assert jnp.allclose(loss1, ref1, rtol=1e-5, atol=1e-6), (loss1, ref1)

    # Case 2: exercises multi-tile accumulation + last-tile row masking + sum.
    N2, C2 = 37, 24
    logits2 = jax.random.normal(k3, (N2, C2), dtype=jnp.float32)
    targets2 = jax.random.randint(k4, (N2,), 0, C2, dtype=jnp.int32)
    alpha2 = jnp.ones((C2, 1), dtype=jnp.float32)

    loss2 = focal_loss(logits2, targets2, alpha2, gamma=2, size_average=False,
                       tile_n=8)
    jax.block_until_ready(loss2)
    ref2 = _focal_loss_ref(logits2, targets2, alpha2, gamma=2, size_average=False)
    assert jnp.allclose(loss2, ref2, rtol=1e-5, atol=1e-5), (loss2, ref2)

    print("KERNEL_OK")
</pallas_src>

<mosaic_0001>
module attributes {stable_mosaic.version = 11 : i64} {
  func.func @_focal_loss_kernel(%arg0: i32, %arg1: memref<8x16xf32, #tpu.memory_space<vmem>>, %arg2: memref<8x1xi32, #tpu.memory_space<vmem>>, %arg3: memref<1x16xf32, #tpu.memory_space<vmem>>, %arg4: memref<1x1xf32, #tpu.memory_space<vmem>>) attributes {dimension_semantics = [#tpu.dimension_semantics<arbitrary>], iteration_bounds = array<i64: 1>, scalar_prefetch = 0 : i64, scratch_operands = 0 : i64, tpu.core_type = #tpu.core_type<tc>, window_params = [{transform_indices = @transform_0, window_bounds = array<i64: 8, 16>}, {transform_indices = @transform_1, window_bounds = array<i64: 8, 1>}, {pipeline_mode = #tpu.pipeline_mode<synchronous>, transform_indices = @transform_2, window_bounds = array<i64: 1, 16>}, {pipeline_mode = #tpu.pipeline_mode<synchronous>, transform_indices = @transform_3, window_bounds = array<i64: 1, 1>}]} {
    %c0_i32 = arith.constant 0 : i32
    %0 = arith.cmpi eq, %arg0, %c0_i32 : i32
    %1 = arith.extui %0 : i1 to i32
    %c0_i32_0 = arith.constant 0 : i32
    %2 = arith.cmpi ne, %1, %c0_i32_0 : i32
    scf.if %2 {
      %cst_21 = arith.constant 0.000000e+00 : f32
      %57 = vector.broadcast %cst_21 : f32 to vector<1x1xf32>
      %c0_22 = arith.constant 0 : index
      %c0_23 = arith.constant 0 : index
      %58 = vector.load %arg4[%c0_22, %c0_23] : memref<1x1xf32, #tpu.memory_space<vmem>>, vector<1x1xf32>
      tpu.vector_store %arg4[%c0_22, %c0_23], %57 {strides = array<i32>} : memref<1x1xf32, #tpu.memory_space<vmem>>, vector<1x1xf32>,
    } else {
    }
    %c0 = arith.constant 0 : index
    %c0_1 = arith.constant 0 : index
    %3 = vector.load %arg1[%c0, %c0_1] : memref<8x16xf32, #tpu.memory_space<vmem>>, vector<8x16xf32>
    %c0_2 = arith.constant 0 : index
    %c0_3 = arith.constant 0 : index
    %4 = vector.load %arg2[%c0_2, %c0_3] : memref<8x1xi32, #tpu.memory_space<vmem>>, vector<8x1xi32>
    %c0_4 = arith.constant 0 : index
    %c0_5 = arith.constant 0 : index
    %5 = vector.load %arg3[%c0_4, %c0_5] : memref<1x16xf32, #tpu.memory_space<vmem>>, vector<1x16xf32>
    %6 = tpu.iota {dimensions = array<i32: 1>} : vector<8x16xi32>
    %7 = vector.broadcast %4 : vector<8x1xi32> to vector<8x16xi32>
    %8 = arith.cmpi eq, %6, %7 : vector<8x16xi32>
    %9 = arith.extui %8 : vector<8x16xi1> to vector<8x16xi32>
    %10 = arith.sitofp %9 : vector<8x16xi32> to vector<8x16xf32>
    %cst = arith.constant dense<0xFF800000> : vector<8xf32>
    %11 = vector.multi_reduction <maximumf>, %3, %cst [1] : vector<8x16xf32> to vector<8xf32>
    %12 = vector.shape_cast %11 : vector<8xf32> to vector<8x1xf32>
    %13 = vector.broadcast %12 : vector<8x1xf32> to vector<8x16xf32>
    %14 = arith.subf %3, %13 : vector<8x16xf32>
    %15 = math.exp %14 : vector<8x16xf32>
    %cst_6 = arith.constant dense<0.000000e+00> : vector<8xf32>
    %16 = vector.multi_reduction <add>, %15, %cst_6 [1] : vector<8x16xf32> to vector<8xf32>
    %17 = vector.shape_cast %16 : vector<8xf32> to vector<8x1xf32>
    %18 = arith.mulf %3, %10 : vector<8x16xf32>
    %cst_7 = arith.constant dense<0.000000e+00> : vector<8xf32>
    %19 = vector.multi_reduction <add>, %18, %cst_7 [1] : vector<8x16xf32> to vector<8xf32>
    %20 = vector.shape_cast %19 : vector<8xf32> to vector<8x1xf32>
    %21 = arith.subf %20, %12 : vector<8x1xf32>
    %22 = math.log %17 : vector<8x1xf32>
    %23 = arith.subf %21, %22 : vector<8x1xf32>
    %24 = math.exp %23 : vector<8x1xf32>
    %25 = vector.broadcast %5 : vector<1x16xf32> to vector<8x16xf32>
    %26 = arith.mulf %10, %25 : vector<8x16xf32>
    %cst_8 = arith.constant dense<0.000000e+00> : vector<8xf32>
    %27 = vector.multi_reduction <add>, %26, %cst_8 [1] : vector<8x16xf32> to vector<8xf32>
    %28 = vector.shape_cast %27 : vector<8xf32> to vector<8x1xf32>
    %cst_9 = arith.constant 1.000000e+00 : f32
    %29 = vector.broadcast %cst_9 : f32 to vector<8x1xf32>
    %30 = arith.subf %29, %24 : vector<8x1xf32>
    %cst_10 = arith.constant 1.000000e+00 : f32
    %31 = vector.broadcast %cst_10 : f32 to vector<8x1xf32>
    %32 = arith.mulf %31, %30 : vector<8x1xf32>
    %33 = arith.mulf %32, %30 : vector<8x1xf32>
    %cst_11 = arith.constant 0.000000e+00 : f32
    %34 = vector.broadcast %cst_11 : f32 to vector<8x1xf32>
    %35 = arith.subf %34, %28 : vector<8x1xf32>
    %36 = arith.mulf %35, %33 : vector<8x1xf32>
    %37 = arith.mulf %36, %23 : vector<8x1xf32>
    %c8_i32 = arith.constant 8 : i32
    %38 = arith.muli %arg0, %c8_i32 : i32
    %39 = tpu.iota {dimensions = array<i32: 0>} : vector<8x1xi32>
    %40 = vector.broadcast %38 : i32 to vector<8x1xi32>
    %41 = arith.addi %40, %39 : vector<8x1xi32>
    %c8_i32_12 = arith.constant 8 : i32
    %42 = vector.broadcast %c8_i32_12 : i32 to vector<8x1xi32>
    %43 = arith.cmpi slt, %41, %42 : vector<8x1xi32>
    %cst_13 = arith.constant 0.000000e+00 : f32
    %44 = vector.broadcast %cst_13 : f32 to vector<8x1xf32>
    %45 = arith.select %43, %37, %44 : vector<8x1xi1>, vector<8x1xf32>
    %c0_14 = arith.constant 0 : index
    %c0_15 = arith.constant 0 : index
    %46 = vector.load %arg4[%c0_14, %c0_15] : memref<1x1xf32, #tpu.memory_space<vmem>>, vector<1x1xf32>
    %47 = vector.shape_cast %45 : vector<8x1xf32> to vector<1x8x1xf32>
    %cst_16 = arith.constant dense<0.000000e+00> : vector<1xf32>
    %48 = vector.multi_reduction <add>, %47, %cst_16 [1, 2] : vector<1x8x1xf32> to vector<1xf32>
    %49 = vector.shape_cast %48 : vector<1xf32> to vector<1x1x1xf32>
    %50 = vector.extract %49[0, 0, 0] : f32 from vector<1x1x1xf32>
    %51 = vector.broadcast %50 : f32 to vector<1x1xf32>
    %52 = arith.addf %46, %51 : vector<1x1xf32>
    %c0_17 = arith.constant 0 : index
    %c0_18 = arith.constant 0 : index
    %53 = vector.load %arg4[%c0_17, %c0_18] : memref<1x1xf32, #tpu.memory_space<vmem>>, vector<1x1xf32>
    tpu.vector_store %arg4[%c0_17, %c0_18], %52 {strides = array<i32>} : memref<1x1xf32, #tpu.memory_space<vmem>>, vector<1x1xf32>,
    %c0_i32_19 = arith.constant 0 : i32
    %54 = arith.cmpi eq, %arg0, %c0_i32_19 : i32
    %55 = arith.extui %54 : i1 to i32
    %c0_i32_20 = arith.constant 0 : i32
    %56 = arith.cmpi ne, %55, %c0_i32_20 : i32
    scf.if %56 {
      %c0_21 = arith.constant 0 : index
      %c0_22 = arith.constant 0 : index
      %57 = vector.load %arg4[%c0_21, %c0_22] : memref<1x1xf32, #tpu.memory_space<vmem>>, vector<1x1xf32>
      %cst_23 = arith.constant 1.250000e-01 : f32
      %58 = vector.broadcast %cst_23 : f32 to vector<1x1xf32>
      %59 = arith.mulf %57, %58 : vector<1x1xf32>
      %c0_24 = arith.constant 0 : index
      %c0_25 = arith.constant 0 : index
      %60 = vector.load %arg4[%c0_24, %c0_25] : memref<1x1xf32, #tpu.memory_space<vmem>>, vector<1x1xf32>
      tpu.vector_store %arg4[%c0_24, %c0_25], %59 {strides = array<i32>} : memref<1x1xf32, #tpu.memory_space<vmem>>, vector<1x1xf32>,
    } else {
    }
    return
  }
  func.func @transform_0(%arg0: i32) -> (i32, i32) {
    %c0_i32 = arith.constant 0 : i32
    %c0_i32_0 = arith.constant 0 : i32
    return %arg0, %c0_i32 : i32, i32
  }
  func.func @transform_1(%arg0: i32) -> (i32, i32) {
    %c0_i32 = arith.constant 0 : i32
    %c0_i32_0 = arith.constant 0 : i32
    return %arg0, %c0_i32 : i32, i32
  }
  func.func @transform_2(%arg0: i32) -> (i32, i32) {
    %c0_i32 = arith.constant 0 : i32
    %c0_i32_0 = arith.constant 0 : i32
    %c0_i32_1 = arith.constant 0 : i32
    return %c0_i32, %c0_i32_0 : i32, i32
  }
  func.func @transform_3(%arg0: i32) -> (i32, i32) {
    %c0_i32 = arith.constant 0 : i32
    %c0_i32_0 = arith.constant 0 : i32
    %c0_i32_1 = arith.constant 0 : i32
    return %c0_i32, %c0_i32_0 : i32, i32
  }
}

</mosaic_0001>

<bundles_post_ra>
// kernel: tpu_custom_call.1
= control target key start
LH: loop header
LB: loop body
LE: loop exit
PB: predicated region body
PF: predicated region fallthrough
CT: control target
= control target key end

     0   :  { %vm32_vm0 = vcmask 130048   ;;  %v149_v2 = vmov 0   ;;  %s191_s0 = inlined_call_operand.vmem [shape: f32[8,16], index: 0, kind: input, shape index: {}]   ;;  %s192_s1 = inlined_call_operand.vmem [shape: s32[8,1], index: 1, kind: input, shape index: {}]   ;;  %s193_s2 = inlined_call_operand.vmem [shape: f32[1,16], index: 2, kind: input, shape index: {}]   ;;  %s194_s3 = inlined_call_operand.hbm [shape: f32[1,1], index: 3, kind: output, shape index: {}]  }
   0x1   :  { %v21_v0 = vld [vmem:[%s191_s0] sm:$0xff]  ;;  %115 = vset.pattern.permute.xlu0 %v149_v2 }
   0x2   :  { %v33_v1 = vsel %vm32_vm0, %v21_v0, -inf }
   0x3   :  { %8 = vsyncpa [#allocation3], 0  ;;  %34 = vmax.xlane.f32.xlu0 %v33_v1  ;;  %v22_v3 = vld [vmem:[%s192_s1] sm:$0xff]  ;;  %vm19_vm1 = vcmask 0   ;;  %v150_v4 = vmov 0.0   ;;  %v24_v10 = vlaneseq  ;;  %vm72_vm3 = vcmask 7168  }
   0x4   :  { %20 = vst.msk [vmem:[#allocation2] sm:$0x1] %vm19_vm1, %v150_v4  ;;  %v116_v12 = vld [vmem:[%s193_s2] ss:$0 sm:$0xff]  ;;  %s151_s2 = smov [#allocation2]   ;;  %s100_s20 = sshll.u32 %s194_s3, 4  ;;  %s101_s20 = int_to_ptr.hbm [resolvable:$true] %s100_s20 }
   0x5   :  { %v25_v11 = vand.u32 127, %v24_v10  ;;  %s98_s17 = sshll.u32 %s151_s2, 4  ;;  %s99_s17 = int_to_ptr.vmem [resolvable:$true] %s98_s17 }
   0xb   :  { %v71_v41 = vld [vmem:[#allocation2] sm:$0x1] }
  0x17   :  { %27 = vperm.xlu0 %115, %v22_v3  }
  0x76   :  { %v35_v5 = vpop.xlane.xlu0 %34 }
  0x77   :  { %v36_v6 = vsub.f32 %v21_v0, %v35_v5 }
  0x79   :  { %v37_v7 = vmul.f32 1.442695, %v36_v6 }
  0x7b   :  { %117 = vpow2.f32 %v37_v7 }
  0x81   :  { %v118_v8 = vpop.eup %117 }
  0x82   :  { %v39_v9 = vsel %vm32_vm0, %v118_v8, 0.0 }
  0x83   :  { %40 = vadd.xlane.f32.xlu1 %v39_v9 }
  0x89   :  { %v28_v13 = vpop.permute.xlu0 %27 }
  0x8a   :  { %vm29_vm2 = vcmp.eq.s32.totalorder %v25_v11, %v28_v13 }
  0x8b   :  { %v109_v14 = vsel %vm29_vm2, 1.0, %v150_v4 }
  0x8c   :  { %v55_v15 = vmul.f32 %v116_v12, %v109_v14  ;;  %v42_v16 = vmul.f32 %v109_v14, %v21_v0 }
  0x8e   :  { %v56_v17 = vsel %vm32_vm0, %v55_v15, 0.0  ;;  %v43_v18 = vsel %vm32_vm0, %v42_v16, 0.0 }
  0x8f   :  { %57 = vadd.xlane.f32.xlu2 %v56_v17  ;;  %44 = vadd.xlane.f32.xlu1 %v43_v18 }
  0xf6   :  { %v41_v19 = vpop.xlane.xlu1 %40 }
  0xf7   :  { %119 = vlog2.f32 %v41_v19 }
  0xfd   :  { %v120_v20 = vpop.eup %119 }
  0xfe   :  { %v48_v22 = vmul.f32 0.6931472, %v120_v20 }
 0x102   :  { %v45_v21 = vpop.xlane.xlu1 %44  ;;  %v58_v27 = vpop.xlane.xlu2 %57 }
 0x103   :  { %v46_v23 = vsub.f32 %v45_v21, %v35_v5  ;;  %v61_v29 = vsub.f32 0.0, %v58_v27 }
 0x105   :  { %v49_v24 = vsub.f32 %v46_v23, %v48_v22 }
 0x107   :  { %v50_v25 = vmul.f32 1.442695, %v49_v24 }
 0x109   :  { %121 = vpow2.f32 %v50_v25 }
 0x10f   :  { %v122_v26 = vpop.eup %121 }
 0x110   :  { %v59_v28 = vsub.f32 1.0, %v122_v26 }
 0x112   :  { %v60_v30 = vmul.f32 %v59_v28, %v59_v28 }
 0x114   :  { %v62_v31 = vmul.f32 %v61_v29, %v60_v30 }
 0x116   :  { %v63_v32 = vmul.f32 %v62_v31, %v49_v24 }
 0x118   :  { %v73_v33 = vsel %vm72_vm3, %v63_v32, 0.0 }
 0x119   :  { %74 = vadd.xlane.f32.xlu2 %v73_v33 }
 0x18c   :  { %v75_v34 = vpop.xlane.xlu2 %74 }
 0x18d   :  { %v76_v35 = vrot.slane %v75_v34, 4 }
 0x18f   :  { %v77_v36 = vadd.f32 %v76_v35, %v75_v34 }
 0x191   :  { %v78_v37 = vrot.slane %v77_v36, 2 }
 0x193   :  { %v79_v38 = vadd.f32 %v78_v37, %v77_v36 }
 0x195   :  { %v80_v39 = vrot.slane %v79_v38, 1 }
 0x197   :  { %v81_v40 = vadd.f32 %v80_v39, %v79_v38 }
 0x199   :  { %110 = vpush %v81_v40 }
 0x1ca   :  { %s111_s1 = spop %110 }
 0x1cb   :  { %v83_v42 = vstv %s111_s1 }
 0x1cc   :  { %v84_v43 = vadd.f32 %v83_v42, %v71_v41 }
 0x1ce   :  { %86 = vst.msk [vmem:[#allocation2] sm:$0x1] %vm19_vm1, %v84_v43 }
 0x1d5   :  { %v90_v44 = vld [vmem:[#allocation2] sm:$0x1] }
 0x1d6   :  { %v91_v45 = vmul.f32 0.125, %v90_v44 }
 0x1d8   :  { %92 = vst.msk [vmem:[#allocation2] sm:$0x1] %vm19_vm1, %v91_v45 }
 0x1d9   :  { %103 = dma.vmem_to_hbm [thread:$0]  %s99_s17, 16, %s101_s20, [#allocation3]  }
 0x1da   :  { %147 = dma.done.wait [#allocation3], 16  }
 0x1db   :  { %148 = vsyncadd [#allocation3], 4294967280 }
 0x1dc   :  { %108 = vsyncpa [#allocation3], 1 }

</bundles_post_ra>
